<compile_context>
chip_gen: v7x
topology: tpu7x:2x2x1
jax: 0.10.0
libtpu: 0.0.40
codegen_flags: <defaults>
</compile_context>

<pallas_src>
import functools

import jax
import jax.numpy as jnp
from jax.experimental import pallas as pl
from jax.experimental.pallas import tpu as pltpu

IN_FEATURES = 10
OUT_FEATURES = 1
DEFAULT_TB = 8192  # batch-tile (lane) width; multiple of 128


def _round_up(n, m):
    return ((n + m - 1) // m) * m


def _linear_kernel(x_ref, w_ref, b_ref, o_ref):
    # x_ref: (10, TB) VMEM, w_ref: (10, 1) VMEM, b_ref: (1, 1) SMEM,
    # o_ref: (1, TB) VMEM.
    # VPU multiply with lane-broadcast weight, sublane reduce over the 10
    # feature rows, bias added as a scalar from SMEM.
    y = jnp.sum(x_ref[...] * w_ref[...], axis=0, keepdims=True)
    o_ref[...] = (y + b_ref[0, 0]).astype(o_ref.dtype)


def linear_forward(x, weight, bias, *, tb=DEFAULT_TB):
    """x: (B, 10) f32; weight: (1, 10) f32; bias: (1,) f32 -> (B, 1) f32."""
    B = x.shape[0]
    TB = min(tb, _round_up(max(B, 1), 128))  # lane tile, multiple of 128
    Bp = _round_up(B, TB)                    # padded batch

    # Lane-dense layout plumbing (batch -> lane axis).
    xt = jnp.zeros((IN_FEATURES, Bp), x.dtype).at[:, :B].set(x.T)   # (10, Bp)
    wt = weight.reshape(OUT_FEATURES, IN_FEATURES).T                # (10, 1)
    b2 = bias.reshape(1, 1).astype(jnp.float32)                     # (1, 1)

    yt = pl.pallas_call(
        _linear_kernel,
        out_shape=jax.ShapeDtypeStruct((OUT_FEATURES, Bp), jnp.float32),
        grid=(Bp // TB,),
        in_specs=[
            pl.BlockSpec((IN_FEATURES, TB), lambda i: (0, i)),
            pl.BlockSpec((IN_FEATURES, OUT_FEATURES), lambda i: (0, 0)),
            pl.BlockSpec(memory_space=pltpu.MemorySpace.SMEM),
        ],
        out_specs=pl.BlockSpec((OUT_FEATURES, TB), lambda i: (0, i)),
        compiler_params=pltpu.CompilerParams(
            dimension_semantics=("parallel",)),
    )(xt, wt, b2)

    return yt[:, :B].T  # (B, 1)


if __name__ == "__main__":
    key = jax.random.PRNGKey(0)
    kx, kw, kb, kx2 = jax.random.split(key, 4)

    # Deterministic parameter init (shapes from nn.Linear(10, 1)).
    bound = 1.0 / (IN_FEATURES ** 0.5)
    weight = jax.random.uniform(kw, (OUT_FEATURES, IN_FEATURES),
                                minval=-bound, maxval=bound, dtype=jnp.float32)
    bias = jax.random.uniform(kb, (OUT_FEATURES,),
                              minval=-bound, maxval=bound, dtype=jnp.float32)

    # Small batch (single tile).
    batch = 8
    x = jax.random.normal(kx, (batch, IN_FEATURES), dtype=jnp.float32)
    out = jax.jit(linear_forward)(x, weight, bias)
    jax.block_until_ready(out)
    ref = x @ weight.T + bias
    assert out.shape == (batch, OUT_FEATURES)
    assert jnp.allclose(out, ref, atol=1e-5, rtol=1e-5)

    # Ragged batch with a small forced tile to exercise padding + multi-tile
    # pipelining (grid of 3 steps).
    batch2 = 300
    x2 = jax.random.normal(kx2, (batch2, IN_FEATURES), dtype=jnp.float32)
    out2 = jax.jit(functools.partial(linear_forward, tb=128))(x2, weight, bias)
    jax.block_until_ready(out2)
    ref2 = x2 @ weight.T + bias
    assert out2.shape == (batch2, OUT_FEATURES)
    assert jnp.allclose(out2, ref2, atol=1e-5, rtol=1e-5)

    print("KERNEL_OK")
</pallas_src>

<mosaic_0001>
module attributes {stable_mosaic.version = 11 : i64} {
  func.func @_linear_kernel(%arg0: i32, %arg1: memref<10x128xf32, #tpu.memory_space<vmem>>, %arg2: memref<10x1xf32, #tpu.memory_space<vmem>>, %arg3: memref<1x1xf32, #tpu.memory_space<smem>>, %arg4: memref<1x128xf32, #tpu.memory_space<vmem>>) attributes {dimension_semantics = [#tpu.dimension_semantics<parallel>], iteration_bounds = array<i64: 1>, scalar_prefetch = 0 : i64, scratch_operands = 0 : i64, tpu.core_type = #tpu.core_type<tc>, window_params = [{transform_indices = @transform_0, window_bounds = array<i64: 10, 128>}, {pipeline_mode = #tpu.pipeline_mode<synchronous>, transform_indices = @transform_1, window_bounds = array<i64: 10, 1>}, {transform_indices = @transform_2, window_bounds = array<i64: 1, 1>}, {transform_indices = @transform_3, window_bounds = array<i64: 1, 128>}]} {
    %c0 = arith.constant 0 : index
    %c0_0 = arith.constant 0 : index
    %0 = vector.load %arg1[%c0, %c0_0] : memref<10x128xf32, #tpu.memory_space<vmem>>, vector<10x128xf32>
    %c0_1 = arith.constant 0 : index
    %c0_2 = arith.constant 0 : index
    %1 = vector.load %arg2[%c0_1, %c0_2] : memref<10x1xf32, #tpu.memory_space<vmem>>, vector<10x1xf32>
    %2 = vector.broadcast %1 : vector<10x1xf32> to vector<10x128xf32>
    %3 = arith.mulf %0, %2 : vector<10x128xf32>
    %cst = arith.constant dense<0.000000e+00> : vector<128xf32>
    %4 = vector.multi_reduction <add>, %3, %cst [0] : vector<10x128xf32> to vector<128xf32>
    %5 = vector.shape_cast %4 : vector<128xf32> to vector<1x128xf32>
    %c0_3 = arith.constant 0 : index
    %c0_4 = arith.constant 0 : index
    %6 = memref.load %arg3[%c0_3, %c0_4] : memref<1x1xf32, #tpu.memory_space<smem>>
    %7 = vector.broadcast %6 : f32 to vector<1x128xf32>
    %8 = arith.addf %5, %7 : vector<1x128xf32>
    %c0_5 = arith.constant 0 : index
    %c0_6 = arith.constant 0 : index
    %9 = vector.load %arg4[%c0_5, %c0_6] : memref<1x128xf32, #tpu.memory_space<vmem>>, vector<1x128xf32>
    tpu.vector_store %arg4[%c0_5, %c0_6], %8 {strides = array<i32>} : memref<1x128xf32, #tpu.memory_space<vmem>>, vector<1x128xf32>,
    return
  }
  func.func @transform_0(%arg0: i32) -> (i32, i32) {
    %c0_i32 = arith.constant 0 : i32
    %c0_i32_0 = arith.constant 0 : i32
    return %c0_i32, %arg0 : i32, i32
  }
  func.func @transform_1(%arg0: i32) -> (i32, i32) {
    %c0_i32 = arith.constant 0 : i32
    %c0_i32_0 = arith.constant 0 : i32
    %c0_i32_1 = arith.constant 0 : i32
    return %c0_i32, %c0_i32_0 : i32, i32
  }
  func.func @transform_2(%arg0: i32) -> (i32, i32) {
    %c0_i32 = arith.constant 0 : i32
    %c0_i32_0 = arith.constant 0 : i32
    %c0_i32_1 = arith.constant 0 : i32
    return %c0_i32, %c0_i32_0 : i32, i32
  }
  func.func @transform_3(%arg0: i32) -> (i32, i32) {
    %c0_i32 = arith.constant 0 : i32
    %c0_i32_0 = arith.constant 0 : i32
    return %c0_i32, %arg0 : i32, i32
  }
}

</mosaic_0001>

<bundles_post_ra>
// kernel: linear_forward.1
= control target key start
LH: loop header
LB: loop body
LE: loop exit
PB: predicated region body
PF: predicated region fallthrough
CT: control target
= control target key end

     0   :  { %v50_v0 = vmov 0   ;;  %vm31_vm0 = vcmask 1041408   ;;  %s89_s1 = inlined_call_operand.vmem [shape: f32[10,1], index: 1, kind: input, shape index: {}]   ;;  %s90_s0 = inlined_call_operand.vmem [shape: f32[10,128], index: 0, kind: input, shape index: {}]   ;;  %s91_s2 = inlined_call_operand.<no memory space> [shape: f32[1,1], index: 2, kind: input, shape index: {}]   ;;  %s92_s3 = inlined_call_operand.vmem [shape: f32[1,128], index: 3, kind: output, shape index: {}]  }
   0x1   :  { %49 = vset.pattern.permute.xlu0 %v50_v0  ;;  %v18_v1 = vld [vmem:[%s89_s1 + $0x8] sm:$0x3]  ;;  %v17_v2 = vld [vmem:[%s89_s1] sm:$0xff]  ;;  %v41_v16 = vstv %s91_s2 }
   0x2   :  { %26 = vperm.xlu0 %49, %v18_v1   ;;  %v16_v3 = vld [vmem:[%s90_s0 + $0x8] sm:$0x3]  ;;  %v15_v6 = vld [vmem:[%s90_s0] sm:$0xff] }
   0x6   :  { %21 = vperm.xlu0 %49, %v17_v2  }
  0x81   :  { %v27_v4 = vpop.permute.xlu0 %26 }
  0x82   :  { %v30_v5 = vmul.f32 %v27_v4, %v16_v3 }
  0x84   :  { %v32_v9 = vsel %vm31_vm0, %v30_v5, 0.0 }
  0x85   :  { %v22_v7 = vpop.permute.xlu0 %21 }
  0x86   :  { %v29_v8 = vmul.f32 %v22_v7, %v15_v6 }
  0x88   :  { %v33_v10 = vadd.f32 %v32_v9, %v29_v8 }
  0x8a   :  { %v34_v11 = vrot.slane %v33_v10, 4 }
  0x8c   :  { %v35_v12 = vadd.f32 %v34_v11, %v33_v10 }
  0x8e   :  { %v36_v13 = vrot.slane %v35_v12, 2 }
  0x90   :  { %v37_v14 = vadd.f32 %v36_v13, %v35_v12 }
  0x92   :  { %v38_v15 = vrot.slane %v37_v14, 1 }
  0x94   :  { %v39_v17 = vadd.f32 %v38_v15, %v37_v14 }
  0x96   :  { %v42_v18 = vadd.f32 %v41_v16, %v39_v17 }
  0x98   :  { %43 = vst [vmem:[%s92_s3] sm:$0x1] %v42_v18 }

</bundles_post_ra>
